<compile_context>
chip_gen: v6e
topology: v6e:2x2x1
jax: 0.10.0
libtpu: 0.0.40
codegen_flags: <defaults>
</compile_context>

<pallas_src>
import jax
import jax.numpy as jnp
from jax.experimental import pallas as pl
from jax.experimental.pallas import tpu as pltpu

LANE = 128      # vreg lane width
SUBLANE = 8     # f32 sublanes per vreg


def _round_up(x, m):
    return (x + m - 1) // m * m


def _default_feature_align():
    """v6e/v7x MXUs are 256-wide -> 256-align large dims; v2..v5 are 128-wide."""
    try:
        kind = jax.devices()[0].device_kind.lower()
    except Exception:
        return LANE
    for tag in ("v2", "v3", "v4", "v5"):
        if tag in kind:
            return LANE
    return 256


def _pad_feature(d, align):
    # Tiny dims stay at one vreg width; larger dims round up to the MXU width.
    return LANE if d <= LANE else _round_up(d, align)


def _pad2(a, rows, cols, dtype):
    a = a.astype(dtype)
    return jnp.pad(a, ((0, rows - a.shape[0]), (0, cols - a.shape[1])))


# ---------------------------------------------------------------------------
# Kernel: fused 3-layer MLP over one batch tile.
# ---------------------------------------------------------------------------
def mlp_kernel(x_ref, w1_ref, b1_ref, w2_ref, b2_ref, w3_ref, b3_ref, o_ref):
    """x_ref: (TB, Din_p) bf16; w*: bf16 (in_p, out_p) VMEM-resident;
    b*: (1, out_p) f32; o_ref: (TB, C_p) out_dtype."""
    x = x_ref[...]                                                      # bf16

    # Layer 1 + ReLU (f32 accumulate on MXU; f32 bias/ReLU on VPU).
    h = jnp.dot(x, w1_ref[...], preferred_element_type=jnp.float32) + b1_ref[...]
    h = jnp.maximum(h, 0.0).astype(jnp.bfloat16)

    # Layer 2 + ReLU.
    h = jnp.dot(h, w2_ref[...], preferred_element_type=jnp.float32) + b2_ref[...]
    h = jnp.maximum(h, 0.0).astype(jnp.bfloat16)

    # Layer 3 (no activation).
    out = jnp.dot(h, w3_ref[...], preferred_element_type=jnp.float32) + b3_ref[...]
    o_ref[...] = out.astype(o_ref.dtype)


# ---------------------------------------------------------------------------
# One-time parameter preparation (padding + bf16 cast happens here, NOT per call)
# ---------------------------------------------------------------------------
def prepare_params(params, *, feature_align=None):
    """Pad every feature dim to a lane/MXU-aligned size and cast weights to
    bf16 once. Returns a dict consumed by `neural_net_forward`."""
    if feature_align is None:
        feature_align = _default_feature_align()

    w1, b1 = params["w1"], params["b1"]
    w2, b2 = params["w2"], params["b2"]
    w3, b3 = params["w3"], params["b3"]

    din, hidden = w1.shape
    ncls = w3.shape[1]

    din_p = _pad_feature(din, feature_align)
    h_p = _pad_feature(hidden, feature_align)
    c_p = _pad_feature(ncls, feature_align)

    # Zero padding is exact: padded input cols hit zero weight rows, padded
    # hidden cols get zero bias (ReLU(0)=0), padded classes are trimmed later.
    return {
        "w1": _pad2(w1, din_p, h_p, jnp.bfloat16),
        "b1": _pad2(b1, 1, h_p, jnp.float32),
        "w2": _pad2(w2, h_p, h_p, jnp.bfloat16),
        "b2": _pad2(b2, 1, h_p, jnp.float32),
        "w3": _pad2(w3, h_p, c_p, jnp.bfloat16),
        "b3": _pad2(b3, 1, c_p, jnp.float32),
        "dims": (din, hidden, ncls),
        "padded_dims": (din_p, h_p, c_p),
    }


def _vmem_limit_bytes(tb, din_p, h_p, c_p, out_bytes, single_buffer_weights):
    wbuf = 1 if single_buffer_weights else 2
    weights = 2 * (din_p * h_p + h_p * h_p + h_p * c_p) * wbuf           # bf16
    biases = 4 * (2 * h_p + c_p) * wbuf                                  # f32
    io = 2 * tb * (2 * din_p + out_bytes * c_p)                          # x/out double-buffered
    acts = 4 * tb * (2 * h_p + c_p)                                      # f32 intermediates (bound)
    need = weights + biases + io + acts
    return int(min(max(need * 3 // 2, 32 * 2**20), 128 * 2**20))


# ---------------------------------------------------------------------------
# Forward wrapper
# ---------------------------------------------------------------------------
def neural_net_forward(x, prepared, *, block_batch=None, out_dtype=jnp.bfloat16,
                       trim=True, single_buffer_weights=True):
    din, hidden, ncls = prepared["dims"]
    din_p, h_p, c_p = prepared["padded_dims"]

    batch = x.shape[0]
    assert x.shape[1] == din, "input feature dim mismatch"

    # Batch tile: multiple of 8 sublanes; large enough to amortize per-step
    # overhead, never (much) bigger than the real batch, and small enough to
    # give grid >= 2 for large batches so v7x's 2nd TensorCore is used.
    if block_batch is not None:
        tb = min(_round_up(block_batch, SUBLANE), _round_up(batch, SUBLANE))
    else:
        tb = min(512, _round_up(batch, SUBLANE))
        if batch >= 64:
            tb = min(tb, _round_up(pl.cdiv(batch, 2), SUBLANE))
    b_p = _round_up(batch, tb)
    grid = (b_p // tb,)

    # Only the activation is padded/cast per call.
    xp = jnp.pad(x.astype(jnp.bfloat16), ((0, b_p - batch), (0, din_p - din)))

    # Resident operands: constant block index every step -> stays in VMEM;
    # single-buffered so only one copy of the weights lives in VMEM.
    wb_mode = pl.Buffered(1) if single_buffer_weights else None

    def resident(shape):
        return pl.BlockSpec(shape, lambda i: (0, 0), pipeline_mode=wb_mode)

    out_bytes = jnp.dtype(out_dtype).itemsize
    vmem_limit = _vmem_limit_bytes(tb, din_p, h_p, c_p, out_bytes,
                                   single_buffer_weights)

    out_p = pl.pallas_call(
        mlp_kernel,
        out_shape=jax.ShapeDtypeStruct((b_p, c_p), out_dtype),
        grid=grid,
        in_specs=[
            pl.BlockSpec((tb, din_p), lambda i: (i, 0)),   # x: tiled over batch
            resident((din_p, h_p)), resident((1, h_p)),    # w1, b1
            resident((h_p, h_p)),   resident((1, h_p)),    # w2, b2
            resident((h_p, c_p)),   resident((1, c_p)),    # w3, b3
        ],
        out_specs=pl.BlockSpec((tb, c_p), lambda i: (i, 0)),
        compiler_params=pltpu.CompilerParams(
            dimension_semantics=("parallel",),             # shard batch across TCs
            vmem_limit_bytes=vmem_limit,
        ),
    )(xp, prepared["w1"], prepared["b1"], prepared["w2"], prepared["b2"],
      prepared["w3"], prepared["b3"])

    if trim:
        return out_p[:batch, :ncls]
    return out_p  # padded, lane-dense slab (cheapest for downstream fusion)


# ---------------------------------------------------------------------------
# Init + references (PyTorch-equivalent semantics)
# ---------------------------------------------------------------------------
def init_params(key, input_size, hidden_size, num_classes):
    """Mimics nn.Linear's U(-1/sqrt(fan_in), 1/sqrt(fan_in)); weights stored (in, out)."""
    ks = jax.random.split(key, 6)

    def linear(kw, kb, fan_in, fan_out):
        bound = 1.0 / jnp.sqrt(fan_in)
        w = jax.random.uniform(kw, (fan_in, fan_out), jnp.float32, -bound, bound)
        b = jax.random.uniform(kb, (1, fan_out), jnp.float32, -bound, bound)
        return w, b

    w1, b1 = linear(ks[0], ks[1], input_size, hidden_size)
    w2, b2 = linear(ks[2], ks[3], hidden_size, hidden_size)
    w3, b3 = linear(ks[4], ks[5], hidden_size, num_classes)
    return {"w1": w1, "b1": b1, "w2": w2, "b2": b2, "w3": w3, "b3": b3}


def reference_forward_f32(x, p):
    h = jnp.maximum(x @ p["w1"] + p["b1"], 0.0)
    h = jnp.maximum(h @ p["w2"] + p["b2"], 0.0)
    return h @ p["w3"] + p["b3"]


def reference_forward_bf16(x, p):
    """Mirrors the kernel's bf16-inputs / f32-accumulate numerics."""
    f = lambda a: a.astype(jnp.bfloat16).astype(jnp.float32)
    h = jnp.maximum(f(x) @ f(p["w1"]) + p["b1"], 0.0)
    h = jnp.maximum(f(h) @ f(p["w2"]) + p["b2"], 0.0)
    return f(h) @ f(p["w3"]) + p["b3"]


if __name__ == "__main__":
    input_size, hidden_size, num_classes = 32, 32, 16
    batch = 8

    key = jax.random.PRNGKey(0)
    kx, kp = jax.random.split(key)
    x = jax.random.normal(kx, (batch, input_size), jnp.float32)
    params = init_params(kp, input_size, hidden_size, num_classes)

    prepared = prepare_params(params)   # one-time pad + bf16 cast

    try:
        out = neural_net_forward(x, prepared)
    except Exception:
        # Fallback for JAX versions without single-buffer pipeline_mode support
        # (correctness identical; only VMEM footprint differs).
        out = neural_net_forward(x, prepared, single_buffer_weights=False)
    out = jax.block_until_ready(out)

    assert out.shape == (batch, num_classes)
    assert out.dtype == jnp.bfloat16
    out_f32 = out.astype(jnp.float32)

    # Tight check vs. a reference with the same bf16-in / f32-accumulate /
    # bf16-out numerics.
    ref_bf16 = reference_forward_bf16(x, params).astype(jnp.bfloat16).astype(jnp.float32)
    assert jnp.allclose(out_f32, ref_bf16, atol=2e-2, rtol=2e-2)

    # Loose check vs. the pure-f32 PyTorch-equivalent forward.
    ref_f32 = reference_forward_f32(x, params)
    assert jnp.allclose(out_f32, ref_f32, atol=1e-1, rtol=1e-1)

    print("KERNEL_OK")
</pallas_src>

<mosaic_0001>
module attributes {stable_mosaic.version = 11 : i64} {
  func.func @mlp_kernel(%arg0: i32, %arg1: memref<8x128xbf16, #tpu.memory_space<vmem>>, %arg2: memref<128x128xbf16, #tpu.memory_space<vmem>>, %arg3: memref<1x128xf32, #tpu.memory_space<vmem>>, %arg4: memref<128x128xbf16, #tpu.memory_space<vmem>>, %arg5: memref<1x128xf32, #tpu.memory_space<vmem>>, %arg6: memref<128x128xbf16, #tpu.memory_space<vmem>>, %arg7: memref<1x128xf32, #tpu.memory_space<vmem>>, %arg8: memref<8x128xbf16, #tpu.memory_space<vmem>>) attributes {dimension_semantics = [#tpu.dimension_semantics<parallel>], iteration_bounds = array<i64: 1>, scalar_prefetch = 0 : i64, scratch_operands = 0 : i64, tpu.core_type = #tpu.core_type<tc>, window_params = [{transform_indices = @transform_0, window_bounds = array<i64: 8, 128>}, {pipeline_mode = #tpu.pipeline_mode<synchronous>, transform_indices = @transform_1, window_bounds = array<i64: 128, 128>}, {pipeline_mode = #tpu.pipeline_mode<synchronous>, transform_indices = @transform_2, window_bounds = array<i64: 1, 128>}, {pipeline_mode = #tpu.pipeline_mode<synchronous>, transform_indices = @transform_3, window_bounds = array<i64: 128, 128>}, {pipeline_mode = #tpu.pipeline_mode<synchronous>, transform_indices = @transform_4, window_bounds = array<i64: 1, 128>}, {pipeline_mode = #tpu.pipeline_mode<synchronous>, transform_indices = @transform_5, window_bounds = array<i64: 128, 128>}, {pipeline_mode = #tpu.pipeline_mode<synchronous>, transform_indices = @transform_6, window_bounds = array<i64: 1, 128>}, {transform_indices = @transform_7, window_bounds = array<i64: 8, 128>}]} {
    %c0 = arith.constant 0 : index
    %c0_0 = arith.constant 0 : index
    %0 = vector.load %arg1[%c0, %c0_0] : memref<8x128xbf16, #tpu.memory_space<vmem>>, vector<8x128xbf16>
    %c0_1 = arith.constant 0 : index
    %c0_2 = arith.constant 0 : index
    %1 = vector.load %arg2[%c0_1, %c0_2] : memref<128x128xbf16, #tpu.memory_space<vmem>>, vector<128x128xbf16>
    %cst = arith.constant dense<0.000000e+00> : vector<8x128xf32>
    %2 = tpu.matmul %0, %1, %cst {dimension_numbers = #tpu.dot_dimension_numbers<[1], [0], [0], [1], [0, 0, 1, 1], [], []>} : vector<8x128xbf16>, vector<128x128xbf16>, vector<8x128xf32> -> vector<8x128xf32>
    %c0_3 = arith.constant 0 : index
    %c0_4 = arith.constant 0 : index
    %3 = vector.load %arg3[%c0_3, %c0_4] : memref<1x128xf32, #tpu.memory_space<vmem>>, vector<1x128xf32>
    %4 = vector.broadcast %3 : vector<1x128xf32> to vector<8x128xf32>
    %5 = arith.addf %2, %4 : vector<8x128xf32>
    %cst_5 = arith.constant 0.000000e+00 : f32
    %6 = vector.broadcast %cst_5 : f32 to vector<8x128xf32>
    %7 = arith.maximumf %5, %6 : vector<8x128xf32>
    %8 = arith.truncf %7 : vector<8x128xf32> to vector<8x128xbf16>
    %c0_6 = arith.constant 0 : index
    %c0_7 = arith.constant 0 : index
    %9 = vector.load %arg4[%c0_6, %c0_7] : memref<128x128xbf16, #tpu.memory_space<vmem>>, vector<128x128xbf16>
    %cst_8 = arith.constant dense<0.000000e+00> : vector<8x128xf32>
    %10 = tpu.matmul %8, %9, %cst_8 {dimension_numbers = #tpu.dot_dimension_numbers<[1], [0], [0], [1], [0, 0, 1, 1], [], []>} : vector<8x128xbf16>, vector<128x128xbf16>, vector<8x128xf32> -> vector<8x128xf32>
    %c0_9 = arith.constant 0 : index
    %c0_10 = arith.constant 0 : index
    %11 = vector.load %arg5[%c0_9, %c0_10] : memref<1x128xf32, #tpu.memory_space<vmem>>, vector<1x128xf32>
    %12 = vector.broadcast %11 : vector<1x128xf32> to vector<8x128xf32>
    %13 = arith.addf %10, %12 : vector<8x128xf32>
    %cst_11 = arith.constant 0.000000e+00 : f32
    %14 = vector.broadcast %cst_11 : f32 to vector<8x128xf32>
    %15 = arith.maximumf %13, %14 : vector<8x128xf32>
    %16 = arith.truncf %15 : vector<8x128xf32> to vector<8x128xbf16>
    %c0_12 = arith.constant 0 : index
    %c0_13 = arith.constant 0 : index
    %17 = vector.load %arg6[%c0_12, %c0_13] : memref<128x128xbf16, #tpu.memory_space<vmem>>, vector<128x128xbf16>
    %cst_14 = arith.constant dense<0.000000e+00> : vector<8x128xf32>
    %18 = tpu.matmul %16, %17, %cst_14 {dimension_numbers = #tpu.dot_dimension_numbers<[1], [0], [0], [1], [0, 0, 1, 1], [], []>} : vector<8x128xbf16>, vector<128x128xbf16>, vector<8x128xf32> -> vector<8x128xf32>
    %c0_15 = arith.constant 0 : index
    %c0_16 = arith.constant 0 : index
    %19 = vector.load %arg7[%c0_15, %c0_16] : memref<1x128xf32, #tpu.memory_space<vmem>>, vector<1x128xf32>
    %20 = vector.broadcast %19 : vector<1x128xf32> to vector<8x128xf32>
    %21 = arith.addf %18, %20 : vector<8x128xf32>
    %22 = arith.truncf %21 : vector<8x128xf32> to vector<8x128xbf16>
    %c0_17 = arith.constant 0 : index
    %c0_18 = arith.constant 0 : index
    %23 = vector.load %arg8[%c0_17, %c0_18] : memref<8x128xbf16, #tpu.memory_space<vmem>>, vector<8x128xbf16>
    tpu.vector_store %arg8[%c0_17, %c0_18], %22 {strides = array<i32>} : memref<8x128xbf16, #tpu.memory_space<vmem>>, vector<8x128xbf16>,
    return
  }
  func.func @transform_0(%arg0: i32) -> (i32, i32) {
    %c0_i32 = arith.constant 0 : i32
    %c0_i32_0 = arith.constant 0 : i32
    return %arg0, %c0_i32 : i32, i32
  }
  func.func @transform_1(%arg0: i32) -> (i32, i32) {
    %c0_i32 = arith.constant 0 : i32
    %c0_i32_0 = arith.constant 0 : i32
    %c0_i32_1 = arith.constant 0 : i32
    return %c0_i32, %c0_i32_0 : i32, i32
  }
  func.func @transform_2(%arg0: i32) -> (i32, i32) {
    %c0_i32 = arith.constant 0 : i32
    %c0_i32_0 = arith.constant 0 : i32
    %c0_i32_1 = arith.constant 0 : i32
    return %c0_i32, %c0_i32_0 : i32, i32
  }
  func.func @transform_3(%arg0: i32) -> (i32, i32) {
    %c0_i32 = arith.constant 0 : i32
    %c0_i32_0 = arith.constant 0 : i32
    %c0_i32_1 = arith.constant 0 : i32
    return %c0_i32, %c0_i32_0 : i32, i32
  }
  func.func @transform_4(%arg0: i32) -> (i32, i32) {
    %c0_i32 = arith.constant 0 : i32
    %c0_i32_0 = arith.constant 0 : i32
    %c0_i32_1 = arith.constant 0 : i32
    return %c0_i32, %c0_i32_0 : i32, i32
  }
  func.func @transform_5(%arg0: i32) -> (i32, i32) {
    %c0_i32 = arith.constant 0 : i32
    %c0_i32_0 = arith.constant 0 : i32
    %c0_i32_1 = arith.constant 0 : i32
    return %c0_i32, %c0_i32_0 : i32, i32
  }
  func.func @transform_6(%arg0: i32) -> (i32, i32) {
    %c0_i32 = arith.constant 0 : i32
    %c0_i32_0 = arith.constant 0 : i32
    %c0_i32_1 = arith.constant 0 : i32
    return %c0_i32, %c0_i32_0 : i32, i32
  }
  func.func @transform_7(%arg0: i32) -> (i32, i32) {
    %c0_i32 = arith.constant 0 : i32
    %c0_i32_0 = arith.constant 0 : i32
    return %arg0, %c0_i32 : i32, i32
  }
}

module attributes {stable_mosaic.version = 11 : i64} {
  func.func @mlp_kernel(%arg0: i32, %arg1: memref<8x128xbf16, #tpu.memory_space<vmem>>, %arg2: memref<128x128xbf16, #tpu.memory_space<vmem>>, %arg3: memref<1x128xf32, #tpu.memory_space<vmem>>, %arg4: memref<128x128xbf16, #tpu.memory_space<vmem>>, %arg5: memref<1x128xf32, #tpu.memory_space<vmem>>, %arg6: memref<128x128xbf16, #tpu.memory_space<vmem>>, %arg7: memref<1x128xf32, #tpu.memory_space<vmem>>, %arg8: memref<8x128xbf16, #tpu.memory_space<vmem>>) attributes {dimension_semantics = [#tpu.dimension_semantics<parallel>], iteration_bounds = array<i64: 1>, scalar_prefetch = 0 : i64, scratch_operands = 0 : i64, tpu.core_type = #tpu.core_type<tc>, window_params = [{transform_indices = @transform_0, window_bounds = array<i64: 8, 128>}, {pipeline_mode = #tpu.pipeline_mode<synchronous>, transform_indices = @transform_1, window_bounds = array<i64: 128, 128>}, {pipeline_mode = #tpu.pipeline_mode<synchronous>, transform_indices = @transform_2, window_bounds = array<i64: 1, 128>}, {pipeline_mode = #tpu.pipeline_mode<synchronous>, transform_indices = @transform_3, window_bounds = array<i64: 128, 128>}, {pipeline_mode = #tpu.pipeline_mode<synchronous>, transform_indices = @transform_4, window_bounds = array<i64: 1, 128>}, {pipeline_mode = #tpu.pipeline_mode<synchronous>, transform_indices = @transform_5, window_bounds = array<i64: 128, 128>}, {pipeline_mode = #tpu.pipeline_mode<synchronous>, transform_indices = @transform_6, window_bounds = array<i64: 1, 128>}, {transform_indices = @transform_7, window_bounds = array<i64: 8, 128>}]} {
    %c0 = arith.constant 0 : index
    %c0_0 = arith.constant 0 : index
    %0 = vector.load %arg1[%c0, %c0_0] : memref<8x128xbf16, #tpu.memory_space<vmem>>, vector<8x128xbf16>
    %c0_1 = arith.constant 0 : index
    %c0_2 = arith.constant 0 : index
    %1 = vector.load %arg2[%c0_1, %c0_2] : memref<128x128xbf16, #tpu.memory_space<vmem>>, vector<128x128xbf16>
    %cst = arith.constant dense<0.000000e+00> : vector<8x128xf32>
    %2 = tpu.matmul %0, %1, %cst {dimension_numbers = #tpu.dot_dimension_numbers<[1], [0], [0], [1], [0, 0, 1, 1], [], []>} : vector<8x128xbf16>, vector<128x128xbf16>, vector<8x128xf32> -> vector<8x128xf32>
    %c0_3 = arith.constant 0 : index
    %c0_4 = arith.constant 0 : index
    %3 = vector.load %arg3[%c0_3, %c0_4] : memref<1x128xf32, #tpu.memory_space<vmem>>, vector<1x128xf32>
    %4 = vector.broadcast %3 : vector<1x128xf32> to vector<8x128xf32>
    %5 = arith.addf %2, %4 : vector<8x128xf32>
    %cst_5 = arith.constant 0.000000e+00 : f32
    %6 = vector.broadcast %cst_5 : f32 to vector<8x128xf32>
    %7 = arith.maximumf %5, %6 : vector<8x128xf32>
    %8 = arith.truncf %7 : vector<8x128xf32> to vector<8x128xbf16>
    %c0_6 = arith.constant 0 : index
    %c0_7 = arith.constant 0 : index
    %9 = vector.load %arg4[%c0_6, %c0_7] : memref<128x128xbf16, #tpu.memory_space<vmem>>, vector<128x128xbf16>
    %cst_8 = arith.constant dense<0.000000e+00> : vector<8x128xf32>
    %10 = tpu.matmul %8, %9, %cst_8 {dimension_numbers = #tpu.dot_dimension_numbers<[1], [0], [0], [1], [0, 0, 1, 1], [], []>} : vector<8x128xbf16>, vector<128x128xbf16>, vector<8x128xf32> -> vector<8x128xf32>
    %c0_9 = arith.constant 0 : index
    %c0_10 = arith.constant 0 : index
    %11 = vector.load %arg5[%c0_9, %c0_10] : memref<1x128xf32, #tpu.memory_space<vmem>>, vector<1x128xf32>
    %12 = vector.broadcast %11 : vector<1x128xf32> to vector<8x128xf32>
    %13 = arith.addf %10, %12 : vector<8x128xf32>
    %cst_11 = arith.constant 0.000000e+00 : f32
    %14 = vector.broadcast %cst_11 : f32 to vector<8x128xf32>
    %15 = arith.maximumf %13, %14 : vector<8x128xf32>
    %16 = arith.truncf %15 : vector<8x128xf32> to vector<8x128xbf16>
    %c0_12 = arith.constant 0 : index
    %c0_13 = arith.constant 0 : index
    %17 = vector.load %arg6[%c0_12, %c0_13] : memref<128x128xbf16, #tpu.memory_space<vmem>>, vector<128x128xbf16>
    %cst_14 = arith.constant dense<0.000000e+00> : vector<8x128xf32>
    %18 = tpu.matmul %16, %17, %cst_14 {dimension_numbers = #tpu.dot_dimension_numbers<[1], [0], [0], [1], [0, 0, 1, 1], [], []>} : vector<8x128xbf16>, vector<128x128xbf16>, vector<8x128xf32> -> vector<8x128xf32>
    %c0_15 = arith.constant 0 : index
    %c0_16 = arith.constant 0 : index
    %19 = vector.load %arg7[%c0_15, %c0_16] : memref<1x128xf32, #tpu.memory_space<vmem>>, vector<1x128xf32>
    %20 = vector.broadcast %19 : vector<1x128xf32> to vector<8x128xf32>
    %21 = arith.addf %18, %20 : vector<8x128xf32>
    %22 = arith.truncf %21 : vector<8x128xf32> to vector<8x128xbf16>
    %c0_17 = arith.constant 0 : index
    %c0_18 = arith.constant 0 : index
    %23 = vector.load %arg8[%c0_17, %c0_18] : memref<8x128xbf16, #tpu.memory_space<vmem>>, vector<8x128xbf16>
    tpu.vector_store %arg8[%c0_17, %c0_18], %22 {strides = array<i32>} : memref<8x128xbf16, #tpu.memory_space<vmem>>, vector<8x128xbf16>,
    return
  }
  func.func @transform_0(%arg0: i32) -> (i32, i32) {
    %c0_i32 = arith.constant 0 : i32
    %c0_i32_0 = arith.constant 0 : i32
    return %arg0, %c0_i32 : i32, i32
  }
  func.func @transform_1(%arg0: i32) -> (i32, i32) {
    %c0_i32 = arith.constant 0 : i32
    %c0_i32_0 = arith.constant 0 : i32
    %c0_i32_1 = arith.constant 0 : i32
    return %c0_i32, %c0_i32_0 : i32, i32
  }
  func.func @transform_2(%arg0: i32) -> (i32, i32) {
    %c0_i32 = arith.constant 0 : i32
    %c0_i32_0 = arith.constant 0 : i32
    %c0_i32_1 = arith.constant 0 : i32
    return %c0_i32, %c0_i32_0 : i32, i32
  }
  func.func @transform_3(%arg0: i32) -> (i32, i32) {
    %c0_i32 = arith.constant 0 : i32
    %c0_i32_0 = arith.constant 0 : i32
    %c0_i32_1 = arith.constant 0 : i32
    return %c0_i32, %c0_i32_0 : i32, i32
  }
  func.func @transform_4(%arg0: i32) -> (i32, i32) {
    %c0_i32 = arith.constant 0 : i32
    %c0_i32_0 = arith.constant 0 : i32
    %c0_i32_1 = arith.constant 0 : i32
    return %c0_i32, %c0_i32_0 : i32, i32
  }
  func.func @transform_5(%arg0: i32) -> (i32, i32) {
    %c0_i32 = arith.constant 0 : i32
    %c0_i32_0 = arith.constant 0 : i32
    %c0_i32_1 = arith.constant 0 : i32
    return %c0_i32, %c0_i32_0 : i32, i32
  }
  func.func @transform_6(%arg0: i32) -> (i32, i32) {
    %c0_i32 = arith.constant 0 : i32
    %c0_i32_0 = arith.constant 0 : i32
    %c0_i32_1 = arith.constant 0 : i32
    return %c0_i32, %c0_i32_0 : i32, i32
  }
  func.func @transform_7(%arg0: i32) -> (i32, i32) {
    %c0_i32 = arith.constant 0 : i32
    %c0_i32_0 = arith.constant 0 : i32
    return %arg0, %c0_i32 : i32, i32
  }
}

</mosaic_0001>

<bundles_post_ra>
// kernel: tpu_custom_call.1
= control target key start
LH: loop header
LB: loop body
LE: loop exit
PB: predicated region body
PF: predicated region fallthrough
CT: control target
= control target key end

     0   :  { %12 = vsyncpa [#allocation3], 0  ;;  %s805_s0 = inlined_call_operand.hbm [shape: bf16[8,128], index: 0, kind: input, shape index: {}]   ;;  %s806_s1 = inlined_call_operand.hbm [shape: bf16[128,128], index: 1, kind: input, shape index: {}]   ;;  %s807_s2 = inlined_call_operand.vmem [shape: f32[1,128], index: 2, kind: input, shape index: {}]   ;;  %s808_s3 = inlined_call_operand.hbm [shape: bf16[128,128], index: 3, kind: input, shape index: {}]   ;;  %s809_s4 = inlined_call_operand.vmem [shape: f32[1,128], index: 4, kind: input, shape index: {}]   ;;  %s810_s5 = inlined_call_operand.hbm [shape: bf16[128,128], index: 5, kind: input, shape index: {}]   ;;  %s811_s6 = inlined_call_operand.vmem [shape: f32[1,128], index: 6, kind: input, shape index: {}]   ;;  %s812_s7 = inlined_call_operand.hbm [shape: bf16[8,128], index: 7, kind: output, shape index: {}]  }
   0x1   :  { %13 = vsyncpa [#allocation6], 0 }
   0x2   :  { %14 = vsyncpa [#allocation9], 0 }
   0x3   :  { %15 = vsyncpa [#allocation4], 0  ;;  %s693_s24 = smov [#allocation5]  }
   0x4   :  { %s31_s25 = sshll.u32 %s693_s24, 4  ;;  %s32_s25 = int_to_ptr.vmem [resolvable:$true] %s31_s25 }
   0x5   :  { %s593_s26 = scalar_lea.vmem %s32_s25, 1024  ;;  %p598_p1 = scmp.lt.s32.totalorder %s32_s25, %s32_s25 }
   0x6   :  { %p594_p0 = scmp.ne.s32.totalorder %s32_s25, %s593_s26  ;;  %p599_p2 = scmp.lt.s32.totalorder %s593_s26, %s593_s26 }
   0x8   :  { %p600_p3 = por %p599_p2, %p598_p1 }
   0xa   :  { %p601_p4 = pnand %p600_p3, %p594_p0 }
   0xc   :  { %604 = shalt.err (!%p601_p4)
}
   0xd   :  { %s694_s27 = smov 64   ;;  %s695_s28 = smov 4  }
   0xe   :  { %37 = dma.hbm_to_vmem [thread:$0]  %s806_s1, 1024, %s32_s25, [#allocation6], %s694_s27, %s694_s27, %s695_s28  }
   0xf   :  { %s696_s8 = smov [#allocation2]   ;;  %s697_s10 = smov [#allocation7]  }
  0x10   :  { %s22_s9 = sshll.u32 %s696_s8, 4  ;;  %s45_s11 = sshll.u32 %s697_s10, 4  ;;  %s23_s9 = int_to_ptr.vmem [resolvable:$true] %s22_s9  ;;  %s46_s11 = int_to_ptr.vmem [resolvable:$true] %s45_s11 }
  0x11   :  { %s613_s12 = scalar_lea.vmem %s23_s9, 64  ;;  %p618_p6 = scmp.lt.s32.totalorder %s23_s9, %s23_s9 }
  0x12   :  { %p614_p5 = scmp.ne.s32.totalorder %s23_s9, %s613_s12  ;;  %p619_p7 = scmp.lt.s32.totalorder %s613_s12, %s613_s12 }
  0x14   :  { %p620_p8 = por %p619_p7, %p618_p6 }
  0x16   :  { %p621_p9 = pnand %p620_p8, %p614_p5 }
  0x18   :  { %624 = shalt.err (!%p621_p9)
}
  0x19   :  { %25 = dma.hbm_to_vmem [thread:$0]  %s805_s0, 64, %s23_s9, [#allocation3]  }
  0x1a   :  { %s633_s15 = scalar_lea.vmem %s46_s11, 1024  ;;  %p638_p11 = scmp.lt.s32.totalorder %s46_s11, %s46_s11 }
  0x1b   :  { %p634_p10 = scmp.ne.s32.totalorder %s46_s11, %s633_s15  ;;  %p639_p12 = scmp.lt.s32.totalorder %s633_s15, %s633_s15 }
  0x1d   :  { %p640_p13 = por %p639_p12, %p638_p11 }
  0x1f   :  { %p641_p0 = pnand %p640_p13, %p634_p10 }
  0x21   :  { %644 = shalt.err (!%p641_p0)
}
  0x22   :  { %51 = dma.hbm_to_vmem [thread:$0]  %s808_s3, 1024, %s46_s11, [#allocation6], %s694_s27, %s694_s27, %s695_s28  }
  0x23   :  { %s698_s17 = smov [#allocation8]  }
  0x24   :  { %s59_s18 = sshll.u32 %s698_s17, 4  ;;  %s60_s18 = int_to_ptr.vmem [resolvable:$true] %s59_s18 }
  0x25   :  { %s653_s19 = scalar_lea.vmem %s60_s18, 1024  ;;  %p658_p2 = scmp.lt.s32.totalorder %s60_s18, %s60_s18 }
  0x26   :  { %p654_p1 = scmp.ne.s32.totalorder %s60_s18, %s653_s19  ;;  %p659_p3 = scmp.lt.s32.totalorder %s653_s19, %s653_s19 }
  0x28   :  { %p660_p4 = por %p659_p3, %p658_p2 }
  0x2a   :  { %p661_p5 = pnand %p660_p4, %p654_p1 }
  0x2c   :  { %664 = shalt.err (!%p661_p5)
}
  0x2d   :  { %65 = dma.hbm_to_vmem [thread:$0]  %s810_s5, 1024, %s60_s18, [#allocation9], %s694_s27, %s694_s27, %s695_s28  }
  0x2e   :  { %685 = dma.done.wait [#allocation3], 64  }
  0x2f   :  { %686 = vsyncadd [#allocation3], 4294967232 }
  0x30   :  { %687 = dma.done.wait [#allocation6], 2048  }
  0x31   :  { %688 = vsyncadd [#allocation6], 4294965248 }
  0x32   :  { %689 = dma.done.wait [#allocation9], 1024  }
  0x33   :  { %690 = vsyncadd [#allocation9], 4294966272  ;;  %v699_v0 = vmov 0.0   ;;  %vm700_vm0 = vmmov 0   ;;  %v561_v1 = vld [vmem:[#allocation5 + $0x38] sm:$0xff]   ;;  %v562_v2 = vld [vmem:[#allocation5 + $0x30] sm:$0xff]  }
  0x34   :  { %492 = vmatprep.subr.bf16.mxu0 %v699_v0  ;;  %508 = vmatprep.mubr.msk.bf16.mxu0 %vm700_vm0, %v699_v0  ;;  %v563_v3 = vld [vmem:[#allocation5 + $0x28] sm:$0xff]   ;;  %v569_v4 = vld [vmem:[#allocation7 + $0x38] sm:$0xff]   ;;  %v564_v5 = vld [vmem:[#allocation5 + $0x20] sm:$0xff]   ;;  %s701_s24 = smov [#allocation10]  }
  0x35   :  { %512 = vmatprep.subr.bf16.mxu1 %v699_v0  ;;  %528 = vmatprep.mubr.msk.bf16.mxu1 %vm700_vm0, %v699_v0  ;;  %v570_v6 = vld [vmem:[#allocation7 + $0x30] sm:$0xff]   ;;  %v565_v7 = vld [vmem:[#allocation5 + $0x18] sm:$0xff]   ;;  %v571_v8 = vld [vmem:[#allocation7 + $0x28] sm:$0xff]   ;;  %s427_s25 = sshll.u32 %s701_s24, 4  ;;  %s428_s25 = int_to_ptr.vmem [resolvable:$true] %s427_s25 }
  0x36   :  { %493 = vmatpush3.bf16.msra.mxu0 %v561_v1  ;;  %513 = vmatpush3.bf16.msra.mxu1 %v569_v4  ;;  %v566_v9 = vld [vmem:[#allocation5 + $0x10] sm:$0xff]   ;;  %v572_v10 = vld [vmem:[#allocation7 + $0x20] sm:$0xff]   ;;  %v567_v11 = vld [vmem:[#allocation5 + $0x8] sm:$0xff]   ;;  %p670_p7 = scmp.lt.s32.totalorder %s428_s25, %s428_s25 }
  0x37   :  { %494 = vmatprep.subr.bf16.mxu0 %v699_v0  ;;  %514 = vmatprep.subr.bf16.mxu1 %v699_v0  ;;  %v573_v12 = vld [vmem:[#allocation7 + $0x18] sm:$0xff]   ;;  %v568_v13 = vld [vmem:[#allocation5] sm:$0xff]   ;;  %v574_v14 = vld [vmem:[#allocation7 + $0x10] sm:$0xff]  }
  0x38   :  { %v81_v15 = vld [vmem:[#allocation2] sm:$0xf]  ;;  %v575_v16 = vld [vmem:[#allocation7 + $0x8] sm:$0xff]   ;;  %v576_v17 = vld [vmem:[#allocation7] sm:$0xff]  }
  0x39   :  { %v577_v18 = vld [vmem:[#allocation8 + $0x38] sm:$0xff]   ;;  %v578_v19 = vld [vmem:[#allocation8 + $0x30] sm:$0xff]   ;;  %v579_v20 = vld [vmem:[#allocation8 + $0x28] sm:$0xff]  }
  0x3a   :  { %495 = vmatpush3.bf16.msra.mxu0 %v562_v2  ;;  %515 = vmatpush3.bf16.msra.mxu1 %v570_v6  ;;  %v580_v21 = vld [vmem:[#allocation8 + $0x20] sm:$0xff]   ;;  %v581_v22 = vld [vmem:[#allocation8 + $0x18] sm:$0xff]   ;;  %v582_v23 = vld [vmem:[#allocation8 + $0x10] sm:$0xff]  }
  0x3b   :  { %496 = vmatprep.subr.bf16.mxu0 %v699_v0  ;;  %516 = vmatprep.subr.bf16.mxu1 %v699_v0  ;;  %v438_v24 = vld [vmem:[%s807_s2] ss:$0 sm:$0xff]  ;;  %v583_v32 = vld [vmem:[#allocation8 + $0x8] sm:$0xff]   ;;  %v584_v33 = vld [vmem:[#allocation8] sm:$0xff]  }
  0x3c   :  { %v447_v34 = vld [vmem:[%s809_s4] ss:$0 sm:$0xff]  ;;  %s665_s4 = scalar_lea.vmem %s428_s25, 64 }
  0x3d   :  { %v456_v42 = vld [vmem:[%s811_s6] ss:$0 sm:$0xff]  ;;  %p666_p6 = scmp.ne.s32.totalorder %s428_s25, %s665_s4  ;;  %p671_p8 = scmp.lt.s32.totalorder %s665_s4, %s665_s4 }
  0x3e   :  { %497 = vmatpush3.bf16.msra.mxu0 %v563_v3  ;;  %517 = vmatpush3.bf16.msra.mxu1 %v571_v8 }
  0x3f   :  { %498 = vmatprep.subr.bf16.mxu0 %v699_v0  ;;  %518 = vmatprep.subr.bf16.mxu1 %v699_v0  ;;  %p672_p9 = por %p671_p8, %p670_p7 }
  0x41   :  { %p673_p10 = pnand %p672_p9, %p666_p6 }
  0x42   :  { %499 = vmatpush3.bf16.msra.mxu0 %v564_v5  ;;  %519 = vmatpush3.bf16.msra.mxu1 %v572_v10 }
  0x43   :  { %500 = vmatprep.subr.bf16.mxu0 %v699_v0  ;;  %520 = vmatprep.subr.bf16.mxu1 %v699_v0 }
  0x46   :  { %501 = vmatpush3.bf16.msra.mxu0 %v565_v7  ;;  %521 = vmatpush3.bf16.msra.mxu1 %v573_v12 }
  0x47   :  { %502 = vmatprep.subr.bf16.mxu0 %v699_v0  ;;  %522 = vmatprep.subr.bf16.mxu1 %v699_v0 }
  0x4a   :  { %503 = vmatpush3.bf16.msra.mxu0 %v566_v9  ;;  %523 = vmatpush3.bf16.msra.mxu1 %v574_v14 }
  0x4b   :  { %504 = vmatprep.subr.bf16.mxu0 %v699_v0  ;;  %524 = vmatprep.subr.bf16.mxu1 %v699_v0 }
  0x4e   :  { %505 = vmatpush3.bf16.msra.mxu0 %v567_v11  ;;  %525 = vmatpush3.bf16.msra.mxu1 %v575_v16 }
  0x4f   :  { %506 = vmatprep.subr.bf16.mxu0 %v699_v0  ;;  %526 = vmatprep.subr.bf16.mxu1 %v699_v0 }
  0x52   :  { %507 = vmatpush3.bf16.msra.mxu0 %v568_v13  ;;  %527 = vmatpush3.bf16.msra.mxu1 %v576_v17 }
  0x53   :  { %532 = vmatprep.subr.bf16.mxu0 %v699_v0 }
  0x55   :  { %509 = vmatmul.mubr.bf16.vlgmr.msra.gmra.mxu0 %v81_v15 }
  0x56   :  { %548 = vmatprep.mubr.msk.bf16.mxu0 %vm700_vm0, %v699_v0  ;;  %533 = vmatpush3.bf16.msra.mxu0 %v577_v18 }
  0x57   :  { %534 = vmatprep.subr.bf16.mxu0 %v699_v0 }
  0x5a   :  { %535 = vmatpush3.bf16.msra.mxu0 %v578_v19 }
  0x5b   :  { %536 = vmatprep.subr.bf16.mxu0 %v699_v0 }
  0x5e   :  { %537 = vmatpush3.bf16.msra.mxu0 %v579_v20 }
  0x5f   :  { %538 = vmatprep.subr.bf16.mxu0 %v699_v0 }
  0x62   :  { %539 = vmatpush3.bf16.msra.mxu0 %v580_v21 }
  0x63   :  { %540 = vmatprep.subr.bf16.mxu0 %v699_v0 }
  0x66   :  { %541 = vmatpush3.bf16.msra.mxu0 %v581_v22 }
  0x67   :  { %542 = vmatprep.subr.bf16.mxu0 %v699_v0 }
  0x6a   :  { %543 = vmatpush3.bf16.msra.mxu0 %v582_v23 }
  0x6b   :  { %544 = vmatprep.subr.bf16.mxu0 %v699_v0 }
  0x6e   :  { %545 = vmatpush3.bf16.msra.mxu0 %v583_v32 }
  0x6f   :  { %546 = vmatprep.subr.bf16.mxu0 %v699_v0 }
  0x72   :  { %547 = vmatpush3.bf16.msra.mxu0 %v584_v33 }
 0x115   :  { %v187_v25 = vpop.f32.mrf.mxu0 }
 0x116   :  { %v188_v26 = vadd.f32 %v438_v24, %v187_v25 }
 0x117   :  { %v510_v27 = vpop.f32.mrf.mxu0 }
 0x118   :  { %v193_v28 = vmax.f32 %v188_v26, 0.0 }
 0x119   :  { %v190_v29 = vpop.f32.mrf.mxu0 }
 0x11a   :  { %v194_v30 = vpack.c.bf16 %v193_v28, %v193_v28 }
 0x11b   :  { %v511_v31 = vpop.f32.mrf.mxu0 }
 0x11c   :  { %529 = vmatmul.mubr.bf16.vlgmr.msra.gmra.mxu1 %v194_v30 }
 0x1dc   :  { %v300_v35 = vpop.f32.mrf.mxu1 }
 0x1dd   :  { %v301_v36 = vadd.f32 %v447_v34, %v300_v35 }
 0x1de   :  { %v530_v37 = vpop.f32.mrf.mxu1 }
 0x1df   :  { %v306_v38 = vmax.f32 %v301_v36, 0.0 }
 0x1e0   :  { %v303_v39 = vpop.f32.mrf.mxu1 }
 0x1e1   :  { %v307_v40 = vpack.c.bf16 %v306_v38, %v306_v38 }
 0x1e2   :  { %v531_v41 = vpop.f32.mrf.mxu1 }
 0x1e3   :  { %549 = vmatmul.mubr.bf16.vlgmr.msra.gmra.mxu0 %v307_v40 }
 0x2a3   :  { %v413_v43 = vpop.f32.mrf.mxu0 }
 0x2a4   :  { %v414_v44 = vadd.f32 %v456_v42, %v413_v43 }
 0x2a5   :  { %v550_v45 = vpop.f32.mrf.mxu0 }
 0x2a6   :  { %v419_v46 = vpack.c.bf16 %v414_v44, %v414_v44 }
 0x2a7   :  { %v416_v47 = vpop.f32.mrf.mxu0 }
 0x2a8   :  { %420 = vst [vmem:[#allocation10] sm:$0xf] %v419_v46 }
 0x2a9   :  { %v551_v48 = vpop.f32.mrf.mxu0 }
 0x2aa   :  { %676 = shalt.err (!%p673_p10)
}
 0x2ab   :  { %430 = dma.vmem_to_hbm [thread:$0]  %s428_s25, 64, %s812_s7, [#allocation4]  }
 0x2ac   :  { %691 = dma.done.wait [#allocation4], 64  }
 0x2ad   :  { %692 = vsyncadd [#allocation4], 4294967232 }
 0x2ae   :  { %434 = vsyncpa [#allocation3], 1 }
 0x2af   :  { %435 = vsyncpa [#allocation6], 1 }
 0x2b0   :  { %436 = vsyncpa [#allocation9], 1 }
 0x2b1   :  { %437 = vsyncpa [#allocation4], 1 }

// kernel: tpu_custom_call.1
= control target key start
LH: loop header
LB: loop body
LE: loop exit
PB: predicated region body
PF: predicated region fallthrough
CT: control target
= control target key end

     0   :  { %12 = vsyncpa [#allocation3], 0  ;;  %s805_s0 = inlined_call_operand.hbm [shape: bf16[8,128], index: 0, kind: input, shape index: {}]   ;;  %s806_s1 = inlined_call_operand.hbm [shape: bf16[128,128], index: 1, kind: input, shape index: {}]   ;;  %s807_s2 = inlined_call_operand.vmem [shape: f32[1,128], index: 2, kind: input, shape index: {}]   ;;  %s808_s3 = inlined_call_operand.hbm [shape: bf16[128,128], index: 3, kind: input, shape index: {}]   ;;  %s809_s4 = inlined_call_operand.vmem [shape: f32[1,128], index: 4, kind: input, shape index: {}]   ;;  %s810_s5 = inlined_call_operand.hbm [shape: bf16[128,128], index: 5, kind: input, shape index: {}]   ;;  %s811_s6 = inlined_call_operand.vmem [shape: f32[1,128], index: 6, kind: input, shape index: {}]   ;;  %s812_s7 = inlined_call_operand.hbm [shape: bf16[8,128], index: 7, kind: output, shape index: {}]  }
   0x1   :  { %13 = vsyncpa [#allocation6], 0 }
   0x2   :  { %14 = vsyncpa [#allocation9], 0 }
   0x3   :  { %15 = vsyncpa [#allocation4], 0  ;;  %s693_s24 = smov [#allocation5]  }
   0x4   :  { %s31_s25 = sshll.u32 %s693_s24, 4  ;;  %s32_s25 = int_to_ptr.vmem [resolvable:$true] %s31_s25 }
   0x5   :  { %s593_s26 = scalar_lea.vmem %s32_s25, 1024  ;;  %p598_p1 = scmp.lt.s32.totalorder %s32_s25, %s32_s25 }
   0x6   :  { %p594_p0 = scmp.ne.s32.totalorder %s32_s25, %s593_s26  ;;  %p599_p2 = scmp.lt.s32.totalorder %s593_s26, %s593_s26 }
   0x8   :  { %p600_p3 = por %p599_p2, %p598_p1 }
   0xa   :  { %p601_p4 = pnand %p600_p3, %p594_p0 }
   0xc   :  { %604 = shalt.err (!%p601_p4)
}
   0xd   :  { %s694_s27 = smov 64   ;;  %s695_s28 = smov 4  }
   0xe   :  { %37 = dma.hbm_to_vmem [thread:$0]  %s806_s1, 1024, %s32_s25, [#allocation6], %s694_s27, %s694_s27, %s695_s28  }
   0xf   :  { %s696_s8 = smov [#allocation2]   ;;  %s697_s10 = smov [#allocation7]  }
  0x10   :  { %s22_s9 = sshll.u32 %s696_s8, 4  ;;  %s45_s11 = sshll.u32 %s697_s10, 4  ;;  %s23_s9 = int_to_ptr.vmem [resolvable:$true] %s22_s9  ;;  %s46_s11 = int_to_ptr.vmem [resolvable:$true] %s45_s11 }
  0x11   :  { %s613_s12 = scalar_lea.vmem %s23_s9, 64  ;;  %p618_p6 = scmp.lt.s32.totalorder %s23_s9, %s23_s9 }
  0x12   :  { %p614_p5 = scmp.ne.s32.totalorder %s23_s9, %s613_s12  ;;  %p619_p7 = scmp.lt.s32.totalorder %s613_s12, %s613_s12 }
  0x14   :  { %p620_p8 = por %p619_p7, %p618_p6 }
  0x16   :  { %p621_p9 = pnand %p620_p8, %p614_p5 }
  0x18   :  { %624 = shalt.err (!%p621_p9)
}
  0x19   :  { %25 = dma.hbm_to_vmem [thread:$0]  %s805_s0, 64, %s23_s9, [#allocation3]  }
  0x1a   :  { %s633_s15 = scalar_lea.vmem %s46_s11, 1024  ;;  %p638_p11 = scmp.lt.s32.totalorder %s46_s11, %s46_s11 }
  0x1b   :  { %p634_p10 = scmp.ne.s32.totalorder %s46_s11, %s633_s15  ;;  %p639_p12 = scmp.lt.s32.totalorder %s633_s15, %s633_s15 }
  0x1d   :  { %p640_p13 = por %p639_p12, %p638_p11 }
  0x1f   :  { %p641_p0 = pnand %p640_p13, %p634_p10 }
  0x21   :  { %644 = shalt.err (!%p641_p0)
}
  0x22   :  { %51 = dma.hbm_to_vmem [thread:$0]  %s808_s3, 1024, %s46_s11, [#allocation6], %s694_s27, %s694_s27, %s695_s28  }
  0x23   :  { %s698_s17 = smov [#allocation8]  }
  0x24   :  { %s59_s18 = sshll.u32 %s698_s17, 4  ;;  %s60_s18 = int_to_ptr.vmem [resolvable:$true] %s59_s18 }
  0x25   :  { %s653_s19 = scalar_lea.vmem %s60_s18, 1024  ;;  %p658_p2 = scmp.lt.s32.totalorder %s60_s18, %s60_s18 }
  0x26   :  { %p654_p1 = scmp.ne.s32.totalorder %s60_s18, %s653_s19  ;;  %p659_p3 = scmp.lt.s32.totalorder %s653_s19, %s653_s19 }
  0x28   :  { %p660_p4 = por %p659_p3, %p658_p2 }
  0x2a   :  { %p661_p5 = pnand %p660_p4, %p654_p1 }
  0x2c   :  { %664 = shalt.err (!%p661_p5)
}
  0x2d   :  { %65 = dma.hbm_to_vmem [thread:$0]  %s810_s5, 1024, %s60_s18, [#allocation9], %s694_s27, %s694_s27, %s695_s28  }
  0x2e   :  { %685 = dma.done.wait [#allocation3], 64  }
  0x2f   :  { %686 = vsyncadd [#allocation3], 4294967232 }
  0x30   :  { %687 = dma.done.wait [#allocation6], 2048  }
  0x31   :  { %688 = vsyncadd [#allocation6], 4294965248 }
  0x32   :  { %689 = dma.done.wait [#allocation9], 1024  }
  0x33   :  { %690 = vsyncadd [#allocation9], 4294966272  ;;  %v699_v0 = vmov 0.0   ;;  %vm700_vm0 = vmmov 0   ;;  %v561_v1 = vld [vmem:[#allocation5 + $0x38] sm:$0xff]   ;;  %v562_v2 = vld [vmem:[#allocation5 + $0x30] sm:$0xff]  }
  0x34   :  { %492 = vmatprep.subr.bf16.mxu0 %v699_v0  ;;  %508 = vmatprep.mubr.msk.bf16.mxu0 %vm700_vm0, %v699_v0  ;;  %v563_v3 = vld [vmem:[#allocation5 + $0x28] sm:$0xff]   ;;  %v569_v4 = vld [vmem:[#allocation7 + $0x38] sm:$0xff]   ;;  %v564_v5 = vld [vmem:[#allocation5 + $0x20] sm:$0xff]   ;;  %s701_s24 = smov [#allocation10]  }
  0x35   :  { %512 = vmatprep.subr.bf16.mxu1 %v699_v0  ;;  %528 = vmatprep.mubr.msk.bf16.mxu1 %vm700_vm0, %v699_v0  ;;  %v570_v6 = vld [vmem:[#allocation7 + $0x30] sm:$0xff]   ;;  %v565_v7 = vld [vmem:[#allocation5 + $0x18] sm:$0xff]   ;;  %v571_v8 = vld [vmem:[#allocation7 + $0x28] sm:$0xff]   ;;  %s427_s25 = sshll.u32 %s701_s24, 4  ;;  %s428_s25 = int_to_ptr.vmem [resolvable:$true] %s427_s25 }
  0x36   :  { %493 = vmatpush3.bf16.msra.mxu0 %v561_v1  ;;  %513 = vmatpush3.bf16.msra.mxu1 %v569_v4  ;;  %v566_v9 = vld [vmem:[#allocation5 + $0x10] sm:$0xff]   ;;  %v572_v10 = vld [vmem:[#allocation7 + $0x20] sm:$0xff]   ;;  %v567_v11 = vld [vmem:[#allocation5 + $0x8] sm:$0xff]   ;;  %p670_p7 = scmp.lt.s32.totalorder %s428_s25, %s428_s25 }
  0x37   :  { %494 = vmatprep.subr.bf16.mxu0 %v699_v0  ;;  %514 = vmatprep.subr.bf16.mxu1 %v699_v0  ;;  %v573_v12 = vld [vmem:[#allocation7 + $0x18] sm:$0xff]   ;;  %v568_v13 = vld [vmem:[#allocation5] sm:$0xff]   ;;  %v574_v14 = vld [vmem:[#allocation7 + $0x10] sm:$0xff]  }
  0x38   :  { %v81_v15 = vld [vmem:[#allocation2] sm:$0xf]  ;;  %v575_v16 = vld [vmem:[#allocation7 + $0x8] sm:$0xff]   ;;  %v576_v17 = vld [vmem:[#allocation7] sm:$0xff]  }
  0x39   :  { %v577_v18 = vld [vmem:[#allocation8 + $0x38] sm:$0xff]   ;;  %v578_v19 = vld [vmem:[#allocation8 + $0x30] sm:$0xff]   ;;  %v579_v20 = vld [vmem:[#allocation8 + $0x28] sm:$0xff]  }
  0x3a   :  { %495 = vmatpush3.bf16.msra.mxu0 %v562_v2  ;;  %515 = vmatpush3.bf16.msra.mxu1 %v570_v6  ;;  %v580_v21 = vld [vmem:[#allocation8 + $0x20] sm:$0xff]   ;;  %v581_v22 = vld [vmem:[#allocation8 + $0x18] sm:$0xff]   ;;  %v582_v23 = vld [vmem:[#allocation8 + $0x10] sm:$0xff]  }
  0x3b   :  { %496 = vmatprep.subr.bf16.mxu0 %v699_v0  ;;  %516 = vmatprep.subr.bf16.mxu1 %v699_v0  ;;  %v438_v24 = vld [vmem:[%s807_s2] ss:$0 sm:$0xff]  ;;  %v583_v32 = vld [vmem:[#allocation8 + $0x8] sm:$0xff]   ;;  %v584_v33 = vld [vmem:[#allocation8] sm:$0xff]  }
  0x3c   :  { %v447_v34 = vld [vmem:[%s809_s4] ss:$0 sm:$0xff]  ;;  %s665_s4 = scalar_lea.vmem %s428_s25, 64 }
  0x3d   :  { %v456_v42 = vld [vmem:[%s811_s6] ss:$0 sm:$0xff]  ;;  %p666_p6 = scmp.ne.s32.totalorder %s428_s25, %s665_s4  ;;  %p671_p8 = scmp.lt.s32.totalorder %s665_s4, %s665_s4 }
  0x3e   :  { %497 = vmatpush3.bf16.msra.mxu0 %v563_v3  ;;  %517 = vmatpush3.bf16.msra.mxu1 %v571_v8 }
  0x3f   :  { %498 = vmatprep.subr.bf16.mxu0 %v699_v0  ;;  %518 = vmatprep.subr.bf16.mxu1 %v699_v0  ;;  %p672_p9 = por %p671_p8, %p670_p7 }
  0x41   :  { %p673_p10 = pnand %p672_p9, %p666_p6 }
  0x42   :  { %499 = vmatpush3.bf16.msra.mxu0 %v564_v5  ;;  %519 = vmatpush3.bf16.msra.mxu1 %v572_v10 }
  0x43   :  { %500 = vmatprep.subr.bf16.mxu0 %v699_v0  ;;  %520 = vmatprep.subr.bf16.mxu1 %v699_v0 }
  0x46   :  { %501 = vmatpush3.bf16.msra.mxu0 %v565_v7  ;;  %521 = vmatpush3.bf16.msra.mxu1 %v573_v12 }
  0x47   :  { %502 = vmatprep.subr.bf16.mxu0 %v699_v0  ;;  %522 = vmatprep.subr.bf16.mxu1 %v699_v0 }
  0x4a   :  { %503 = vmatpush3.bf16.msra.mxu0 %v566_v9  ;;  %523 = vmatpush3.bf16.msra.mxu1 %v574_v14 }
  0x4b   :  { %504 = vmatprep.subr.bf16.mxu0 %v699_v0  ;;  %524 = vmatprep.subr.bf16.mxu1 %v699_v0 }
  0x4e   :  { %505 = vmatpush3.bf16.msra.mxu0 %v567_v11  ;;  %525 = vmatpush3.bf16.msra.mxu1 %v575_v16 }
  0x4f   :  { %506 = vmatprep.subr.bf16.mxu0 %v699_v0  ;;  %526 = vmatprep.subr.bf16.mxu1 %v699_v0 }
  0x52   :  { %507 = vmatpush3.bf16.msra.mxu0 %v568_v13  ;;  %527 = vmatpush3.bf16.msra.mxu1 %v576_v17 }
  0x53   :  { %532 = vmatprep.subr.bf16.mxu0 %v699_v0 }
  0x55   :  { %509 = vmatmul.mubr.bf16.vlgmr.msra.gmra.mxu0 %v81_v15 }
  0x56   :  { %548 = vmatprep.mubr.msk.bf16.mxu0 %vm700_vm0, %v699_v0  ;;  %533 = vmatpush3.bf16.msra.mxu0 %v577_v18 }
  0x57   :  { %534 = vmatprep.subr.bf16.mxu0 %v699_v0 }
  0x5a   :  { %535 = vmatpush3.bf16.msra.mxu0 %v578_v19 }
  0x5b   :  { %536 = vmatprep.subr.bf16.mxu0 %v699_v0 }
  0x5e   :  { %537 = vmatpush3.bf16.msra.mxu0 %v579_v20 }
  0x5f   :  { %538 = vmatprep.subr.bf16.mxu0 %v699_v0 }
  0x62   :  { %539 = vmatpush3.bf16.msra.mxu0 %v580_v21 }
  0x63   :  { %540 = vmatprep.subr.bf16.mxu0 %v699_v0 }
  0x66   :  { %541 = vmatpush3.bf16.msra.mxu0 %v581_v22 }
  0x67   :  { %542 = vmatprep.subr.bf16.mxu0 %v699_v0 }
  0x6a   :  { %543 = vmatpush3.bf16.msra.mxu0 %v582_v23 }
  0x6b   :  { %544 = vmatprep.subr.bf16.mxu0 %v699_v0 }
  0x6e   :  { %545 = vmatpush3.bf16.msra.mxu0 %v583_v32 }
  0x6f   :  { %546 = vmatprep.subr.bf16.mxu0 %v699_v0 }
  0x72   :  { %547 = vmatpush3.bf16.msra.mxu0 %v584_v33 }
 0x115   :  { %v187_v25 = vpop.f32.mrf.mxu0 }
 0x116   :  { %v188_v26 = vadd.f32 %v438_v24, %v187_v25 }
 0x117   :  { %v510_v27 = vpop.f32.mrf.mxu0 }
 0x118   :  { %v193_v28 = vmax.f32 %v188_v26, 0.0 }
 0x119   :  { %v190_v29 = vpop.f32.mrf.mxu0 }
 0x11a   :  { %v194_v30 = vpack.c.bf16 %v193_v28, %v193_v28 }
 0x11b   :  { %v511_v31 = vpop.f32.mrf.mxu0 }
 0x11c   :  { %529 = vmatmul.mubr.bf16.vlgmr.msra.gmra.mxu1 %v194_v30 }
 0x1dc   :  { %v300_v35 = vpop.f32.mrf.mxu1 }
 0x1dd   :  { %v301_v36 = vadd.f32 %v447_v34, %v300_v35 }
 0x1de   :  { %v530_v37 = vpop.f32.mrf.mxu1 }
 0x1df   :  { %v306_v38 = vmax.f32 %v301_v36, 0.0 }
 0x1e0   :  { %v303_v39 = vpop.f32.mrf.mxu1 }
 0x1e1   :  { %v307_v40 = vpack.c.bf16 %v306_v38, %v306_v38 }
 0x1e2   :  { %v531_v41 = vpop.f32.mrf.mxu1 }
 0x1e3   :  { %549 = vmatmul.mubr.bf16.vlgmr.msra.gmra.mxu0 %v307_v40 }
 0x2a3   :  { %v413_v43 = vpop.f32.mrf.mxu0 }
 0x2a4   :  { %v414_v44 = vadd.f32 %v456_v42, %v413_v43 }
 0x2a5   :  { %v550_v45 = vpop.f32.mrf.mxu0 }
 0x2a6   :  { %v419_v46 = vpack.c.bf16 %v414_v44, %v414_v44 }
 0x2a7   :  { %v416_v47 = vpop.f32.mrf.mxu0 }
 0x2a8   :  { %420 = vst [vmem:[#allocation10] sm:$0xf] %v419_v46 }
 0x2a9   :  { %v551_v48 = vpop.f32.mrf.mxu0 }
 0x2aa   :  { %676 = shalt.err (!%p673_p10)
}
 0x2ab   :  { %430 = dma.vmem_to_hbm [thread:$0]  %s428_s25, 64, %s812_s7, [#allocation4]  }
 0x2ac   :  { %691 = dma.done.wait [#allocation4], 64  }
 0x2ad   :  { %692 = vsyncadd [#allocation4], 4294967232 }
 0x2ae   :  { %434 = vsyncpa [#allocation3], 1 }
 0x2af   :  { %435 = vsyncpa [#allocation6], 1 }
 0x2b0   :  { %436 = vsyncpa [#allocation9], 1 }
 0x2b1   :  { %437 = vsyncpa [#allocation4], 1 }

</bundles_post_ra>
